<compile_context>
chip_gen: v7x
topology: tpu7x:2x2x1
jax: 0.10.0
libtpu: 0.0.40
codegen_flags: <defaults>
</compile_context>

<pallas_src>
import functools

import jax
import jax.numpy as jnp
from jax.experimental import pallas as pl
from jax.experimental.pallas import tpu as pltpu

EPS = 1e-5  # PyTorch LayerNorm default


# ----------------------------------------------------------------------------
# Kernel
# ----------------------------------------------------------------------------
def _outputlayer_kernel(x_ref, wbig_ref, gwmat_ref, gtfc_ref,
                        b1_ref, b2_ref, bfc_ref, cs1_ref, cs2_ref, out_ref):
    x = x_ref[...]                                                   # (BT, c*T*nnode)

    # tconv1 (kernel (T,1)) + layout permutation as one MXU matmul.
    t1 = jnp.dot(x, wbig_ref[...], preferred_element_type=jnp.float32)
    t1 = t1 + b1_ref[...]                                            # (BT, nnode*c)

    # LN1 stats via E[x], E[x^2]; the matmul below does not wait on them.
    mu1 = jnp.mean(t1, axis=-1, keepdims=True)                       # (BT, 1)
    msq1 = jnp.mean(t1 * t1, axis=-1, keepdims=True)
    rstd1 = jax.lax.rsqrt(msq1 - mu1 * mu1 + EPS)

    # LN1 affine + tconv2 (1x1, c->1) folded into gwmat; mean via column sums.
    p1 = jnp.dot(t1, gwmat_ref[...], preferred_element_type=jnp.float32)
    t2 = rstd1 * (p1 - mu1 * cs1_ref[...]) + b2_ref[...]             # (BT, nnode)

    # LN2 stats.
    mu2 = jnp.mean(t2, axis=-1, keepdims=True)
    msq2 = jnp.mean(t2 * t2, axis=-1, keepdims=True)
    rstd2 = jax.lax.rsqrt(msq2 - mu2 * mu2 + EPS)

    # LN2 affine + fc Toeplitz folded into gtfc; mean via column sums.
    p2 = jnp.dot(t2, gtfc_ref[...], preferred_element_type=jnp.float32)
    out = rstd2 * (p2 - mu2 * cs2_ref[...]) + bfc_ref[...]           # (BT, nclass)

    # Lane-dense store: batch on lanes -> unmasked dense writeback.
    out_ref[...] = jnp.transpose(out).astype(out_ref.dtype)          # (nclass, BT)


# ----------------------------------------------------------------------------
# Host-side (one-time) weight folding
# ----------------------------------------------------------------------------
def prepare_params(params, c, T, nnode, nclass):
    """Fold the five PyTorch layers into packed arrays (once per weight set)."""
    K = nnode - nclass + 1
    CTN = c * T * nnode
    NC = nnode * c
    eye_n = jnp.eye(nnode, dtype=jnp.float32)

    # tconv1 + layout permutation: Wbig[(ci*T+t)*nnode+n, m*c+co] = w1[co,ci,t]*(n==m)
    w1 = params["w1"][:, :, :, 0].astype(jnp.float32)                # (co, ci, t)
    wbig = jnp.einsum("oit,nm->itnmo", w1, eye_n).reshape(CTN, NC)
    b1 = jnp.tile(params["b1"].astype(jnp.float32), nnode).reshape(1, NC)

    # LN1 gamma folded with tconv2 weight (block-diagonal per node).
    w2 = params["w2"][0, :, 0, 0].astype(jnp.float32)                # (c,)
    gw = params["g1"].astype(jnp.float32) * w2[None, :]              # (nnode, c)
    gwmat = jnp.einsum("nc,nm->ncm", gw, eye_n).reshape(NC, nnode)
    b2 = (jnp.sum(params["be1"].astype(jnp.float32) * w2[None, :], axis=-1)
          + params["b2"].astype(jnp.float32)[0]).reshape(1, nnode)

    # fc Toeplitz: tfc[n, j] = wfc[n-j] when 0 <= n-j < K.
    wfc = params["wfc"][0, 0, 0].astype(jnp.float32)                 # (K,)
    d = jnp.arange(nnode)[:, None] - jnp.arange(nclass)[None, :]
    tfc = jnp.where((d >= 0) & (d < K), wfc[jnp.clip(d, 0, K - 1)], 0.0)
    gtfc = params["g2"].astype(jnp.float32) * tfc                    # (nnode, nclass)
    bfc = (jnp.sum(params["be2"].astype(jnp.float32)[:, 0:1] * tfc, axis=0)
           + params["bfc"].astype(jnp.float32)[0]).reshape(1, nclass)

    # Column sums used to apply the LN mean after the matmuls.
    cs1 = jnp.sum(gwmat, axis=0, keepdims=True)                      # (1, nnode)
    cs2 = jnp.sum(gtfc, axis=0, keepdims=True)                       # (1, nclass)

    return {"wbig": wbig, "gwmat": gwmat, "gtfc": gtfc,
            "b1": b1, "b2": b2, "bfc": bfc, "cs1": cs1, "cs2": cs2}


# ----------------------------------------------------------------------------
# Tiling policy
# ----------------------------------------------------------------------------
def _choose_tiling(B, block_b=None):
    """Returns (block_b, steps, padded_B).

    * Small batches: one grid step covering everything (per-step overhead
      dominates; best for the single-TC v5e/v6e).
    * Large batches: 512-row tiles (multiple of 256 -> full MXU rows on every
      generation) and an even step count so v7x's two TensorCores get equal
      work under dimension_semantics=("parallel",).
    * Batch is padded up to block_b * steps; no divisibility requirement.
    """
    b8 = -(-B // 8) * 8
    if block_b is None:
        block_b = b8 if b8 <= 1024 else 512
    else:
        block_b = max(8, -(-block_b // 8) * 8)
    if block_b < b8:
        # Multi-step grids need 128-aligned tiles (lane dim of the transposed
        # output block, and MXU-row alignment anyway).
        block_b = -(-block_b // 128) * 128
    steps = max(1, -(-B // block_b))
    if steps > 1 and steps % 2:
        steps += 1  # even grid: balanced across v7x's two TensorCores
    return block_b, steps, block_b * steps


# ----------------------------------------------------------------------------
# Forward wrapper
# ----------------------------------------------------------------------------
def outputlayer_forward(x, packed, *, c, T, nnode, nclass, block_b=None):
    """x: (B, c, T, nnode, 1) as in the PyTorch module. Returns (B, nclass)."""
    B = x.shape[0]
    CTN = c * T * nnode
    NC = nnode * c
    block_b, steps, Bp = _choose_tiling(B, block_b)

    # Layout permutation lives in `wbig`, so this is a free contiguous reshape.
    x2 = x.reshape(B, CTN).astype(jnp.float32)
    if Bp != B:
        x2 = jnp.pad(x2, ((0, Bp - B), (0, 0)))

    const = lambda i: (0, 0)
    wspec = lambda shape: pl.BlockSpec(shape, const)  # resident, never re-DMA'd

    out = pl.pallas_call(
        _outputlayer_kernel,
        out_shape=jax.ShapeDtypeStruct((nclass, Bp), jnp.float32),
        grid_spec=pltpu.PrefetchScalarGridSpec(
            num_scalar_prefetch=0,
            grid=(steps,),
            in_specs=[
                pl.BlockSpec((block_b, CTN), lambda i: (i, 0)),   # x tile
                wspec((CTN, NC)),        # wbig
                wspec((NC, nnode)),      # gwmat
                wspec((nnode, nclass)),  # gtfc
                wspec((1, NC)),          # b1
                wspec((1, nnode)),       # b2
                wspec((1, nclass)),      # bfc
                wspec((1, nnode)),       # cs1
                wspec((1, nclass)),      # cs2
            ],
            out_specs=pl.BlockSpec((nclass, block_b), lambda i: (0, i)),
        ),
        compiler_params=pltpu.CompilerParams(
            dimension_semantics=("parallel",)),
    )(x2, packed["wbig"], packed["gwmat"], packed["gtfc"],
      packed["b1"], packed["b2"], packed["bfc"], packed["cs1"], packed["cs2"])

    return jnp.transpose(out)[:B]


# ----------------------------------------------------------------------------
# Parameter init + pure-JAX reference (mirrors the PyTorch ops directly)
# ----------------------------------------------------------------------------
def init_params(key, c, T, nnode, nclass):
    K = nnode - nclass + 1
    ks = jax.random.split(key, 8)
    return {
        "w1": jax.random.normal(ks[0], (c, c, T, 1), jnp.float32) * 0.1,
        "b1": jax.random.normal(ks[1], (c,), jnp.float32) * 0.1,
        "g1": 1.0 + 0.05 * jax.random.normal(ks[2], (nnode, c), jnp.float32),
        "be1": 0.05 * jax.random.normal(ks[3], (nnode, c), jnp.float32),
        "w2": jax.random.normal(ks[4], (1, c, 1, 1), jnp.float32) * 0.1,
        "b2": jax.random.normal(ks[5], (1,), jnp.float32) * 0.1,
        "g2": 1.0 + 0.05 * jax.random.normal(ks[6], (nnode, 1), jnp.float32),
        "be2": 0.05 * jax.random.normal(ks[7], (nnode, 1), jnp.float32),
        "wfc": jax.random.normal(jax.random.fold_in(key, 100), (1, 1, 1, K),
                                 jnp.float32) * 0.1,
        "bfc": jax.random.normal(jax.random.fold_in(key, 101), (1,),
                                 jnp.float32) * 0.1,
    }


def outputlayer_reference(x, params, nclass):
    xs = x[..., 0]                                              # (B, c, T, n)
    t1 = jnp.einsum("bctn,oct->bon", xs, params["w1"][:, :, :, 0])
    t1 = t1 + params["b1"][None, :, None]                       # (B, c, n)
    y = jnp.transpose(t1, (0, 2, 1))                            # (B, n, c)
    mu = jnp.mean(y, axis=(1, 2), keepdims=True)
    var = jnp.mean((y - mu) ** 2, axis=(1, 2), keepdims=True)
    y = (y - mu) / jnp.sqrt(var + EPS) * params["g1"][None] + params["be1"][None]
    ln1 = jnp.transpose(y, (0, 2, 1))                           # (B, c, n)
    t2 = jnp.einsum("bcn,oc->bon", ln1, params["w2"][:, :, 0, 0])
    t2 = t2 + params["b2"][None, :, None]                       # (B, 1, n)
    z = jnp.transpose(t2, (0, 2, 1))                            # (B, n, 1)
    mu2 = jnp.mean(z, axis=(1, 2), keepdims=True)
    var2 = jnp.mean((z - mu2) ** 2, axis=(1, 2), keepdims=True)
    z = (z - mu2) / jnp.sqrt(var2 + EPS) * params["g2"][None] + params["be2"][None]
    ln2 = z[:, :, 0]                                            # (B, n)
    wfc = params["wfc"][0, 0, 0]
    K = wfc.shape[0]
    cols = [jnp.sum(ln2[:, j:j + K] * wfc[None], axis=1) for j in range(nclass)]
    return jnp.stack(cols, axis=1) + params["bfc"][0]


if __name__ == "__main__":
    B, c, T, nnode, nclass = 16, 4, 8, 16, 4

    key = jax.random.PRNGKey(0)
    kx, kp = jax.random.split(key)
    x = jax.random.normal(kx, (B, c, T, nnode, 1), jnp.float32)
    params = init_params(kp, c, T, nnode, nclass)

    packed = prepare_params(params, c, T, nnode, nclass)     # once per weight set
    fwd = jax.jit(functools.partial(outputlayer_forward,
                                    c=c, T=T, nnode=nnode, nclass=nclass))

    out = jax.block_until_ready(fwd(x, packed))               # single maximal step
    ref = jax.block_until_ready(outputlayer_reference(x, params, nclass))
    assert out.shape == (B, nclass)
    assert jnp.allclose(out, ref, atol=1e-4, rtol=1e-4), (out, ref)

    # Batch-padding path (B not a multiple of 8).
    out3 = jax.block_until_ready(fwd(x[:3], packed))
    ref3 = jax.block_until_ready(outputlayer_reference(x[:3], params, nclass))
    assert out3.shape == (3, nclass)
    assert jnp.allclose(out3, ref3, atol=1e-4, rtol=1e-4), (out3, ref3)

    # Multi-step grid path: 128-aligned tiles, even step count (272 -> 4x128),
    # padded final block, lane-dense transposed output blocks.
    Bb = 272
    xb = jax.random.normal(jax.random.fold_in(key, 7), (Bb, c, T, nnode, 1),
                           jnp.float32)
    fwd_tiled = jax.jit(functools.partial(outputlayer_forward, c=c, T=T,
                                          nnode=nnode, nclass=nclass,
                                          block_b=128))
    outb = jax.block_until_ready(fwd_tiled(xb, packed))
    refb = jax.block_until_ready(outputlayer_reference(xb, params, nclass))
    assert outb.shape == (Bb, nclass)
    assert jnp.allclose(outb, refb, atol=1e-4, rtol=1e-4), (outb, refb)

    print("KERNEL_OK")
</pallas_src>

<mosaic_0001>
module attributes {stable_mosaic.version = 11 : i64} {
  func.func @_outputlayer_kernel(%arg0: i32, %arg1: memref<16x512xf32, #tpu.memory_space<vmem>>, %arg2: memref<512x64xf32, #tpu.memory_space<vmem>>, %arg3: memref<64x16xf32, #tpu.memory_space<vmem>>, %arg4: memref<16x4xf32, #tpu.memory_space<vmem>>, %arg5: memref<1x64xf32, #tpu.memory_space<vmem>>, %arg6: memref<1x16xf32, #tpu.memory_space<vmem>>, %arg7: memref<1x4xf32, #tpu.memory_space<vmem>>, %arg8: memref<1x16xf32, #tpu.memory_space<vmem>>, %arg9: memref<1x4xf32, #tpu.memory_space<vmem>>, %arg10: memref<4x16xf32, #tpu.memory_space<vmem>>) attributes {dimension_semantics = [#tpu.dimension_semantics<parallel>], iteration_bounds = array<i64: 1>, scalar_prefetch = 0 : i64, scratch_operands = 0 : i64, tpu.core_type = #tpu.core_type<tc>, window_params = [{transform_indices = @transform_0, window_bounds = array<i64: 16, 512>}, {pipeline_mode = #tpu.pipeline_mode<synchronous>, transform_indices = @transform_1, window_bounds = array<i64: 512, 64>}, {pipeline_mode = #tpu.pipeline_mode<synchronous>, transform_indices = @transform_2, window_bounds = array<i64: 64, 16>}, {pipeline_mode = #tpu.pipeline_mode<synchronous>, transform_indices = @transform_3, window_bounds = array<i64: 16, 4>}, {pipeline_mode = #tpu.pipeline_mode<synchronous>, transform_indices = @transform_4, window_bounds = array<i64: 1, 64>}, {pipeline_mode = #tpu.pipeline_mode<synchronous>, transform_indices = @transform_5, window_bounds = array<i64: 1, 16>}, {pipeline_mode = #tpu.pipeline_mode<synchronous>, transform_indices = @transform_6, window_bounds = array<i64: 1, 4>}, {pipeline_mode = #tpu.pipeline_mode<synchronous>, transform_indices = @transform_7, window_bounds = array<i64: 1, 16>}, {pipeline_mode = #tpu.pipeline_mode<synchronous>, transform_indices = @transform_8, window_bounds = array<i64: 1, 4>}, {transform_indices = @transform_9, window_bounds = array<i64: 4, 16>}]} {
    %c0 = arith.constant 0 : index
    %c0_0 = arith.constant 0 : index
    %0 = vector.load %arg1[%c0, %c0_0] : memref<16x512xf32, #tpu.memory_space<vmem>>, vector<16x512xf32>
    %c0_1 = arith.constant 0 : index
    %c0_2 = arith.constant 0 : index
    %1 = vector.load %arg2[%c0_1, %c0_2] : memref<512x64xf32, #tpu.memory_space<vmem>>, vector<512x64xf32>
    %cst = arith.constant dense<0.000000e+00> : vector<16x64xf32>
    %2 = tpu.matmul %0, %1, %cst {dimension_numbers = #tpu.dot_dimension_numbers<[1], [0], [0], [1], [0, 0, 1, 1], [], []>} : vector<16x512xf32>, vector<512x64xf32>, vector<16x64xf32> -> vector<16x64xf32>
    %c0_3 = arith.constant 0 : index
    %c0_4 = arith.constant 0 : index
    %3 = vector.load %arg5[%c0_3, %c0_4] : memref<1x64xf32, #tpu.memory_space<vmem>>, vector<1x64xf32>
    %4 = vector.broadcast %3 : vector<1x64xf32> to vector<16x64xf32>
    %5 = arith.addf %2, %4 : vector<16x64xf32>
    %cst_5 = arith.constant dense<0.000000e+00> : vector<16xf32>
    %6 = vector.multi_reduction <add>, %5, %cst_5 [1] : vector<16x64xf32> to vector<16xf32>
    %7 = vector.shape_cast %6 : vector<16xf32> to vector<16x1xf32>
    %cst_6 = arith.constant 6.400000e+01 : f32
    %8 = vector.broadcast %cst_6 : f32 to vector<16x1xf32>
    %9 = arith.divf %7, %8 : vector<16x1xf32>
    %10 = arith.mulf %5, %5 : vector<16x64xf32>
    %cst_7 = arith.constant dense<0.000000e+00> : vector<16xf32>
    %11 = vector.multi_reduction <add>, %10, %cst_7 [1] : vector<16x64xf32> to vector<16xf32>
    %12 = vector.shape_cast %11 : vector<16xf32> to vector<16x1xf32>
    %cst_8 = arith.constant 6.400000e+01 : f32
    %13 = vector.broadcast %cst_8 : f32 to vector<16x1xf32>
    %14 = arith.divf %12, %13 : vector<16x1xf32>
    %15 = arith.mulf %9, %9 : vector<16x1xf32>
    %16 = arith.subf %14, %15 : vector<16x1xf32>
    %cst_9 = arith.constant 9.99999974E-6 : f32
    %17 = vector.broadcast %cst_9 : f32 to vector<16x1xf32>
    %18 = arith.addf %16, %17 : vector<16x1xf32>
    %19 = math.rsqrt %18 : vector<16x1xf32>
    %c0_10 = arith.constant 0 : index
    %c0_11 = arith.constant 0 : index
    %20 = vector.load %arg3[%c0_10, %c0_11] : memref<64x16xf32, #tpu.memory_space<vmem>>, vector<64x16xf32>
    %cst_12 = arith.constant dense<0.000000e+00> : vector<16x16xf32>
    %21 = tpu.matmul %5, %20, %cst_12 {dimension_numbers = #tpu.dot_dimension_numbers<[1], [0], [0], [1], [0, 0, 1, 1], [], []>} : vector<16x64xf32>, vector<64x16xf32>, vector<16x16xf32> -> vector<16x16xf32>
    %c0_13 = arith.constant 0 : index
    %c0_14 = arith.constant 0 : index
    %22 = vector.load %arg8[%c0_13, %c0_14] : memref<1x16xf32, #tpu.memory_space<vmem>>, vector<1x16xf32>
    %23 = vector.broadcast %9 : vector<16x1xf32> to vector<16x16xf32>
    %24 = vector.broadcast %22 : vector<1x16xf32> to vector<16x16xf32>
    %25 = arith.mulf %23, %24 : vector<16x16xf32>
    %26 = arith.subf %21, %25 : vector<16x16xf32>
    %27 = vector.broadcast %19 : vector<16x1xf32> to vector<16x16xf32>
    %28 = arith.mulf %27, %26 : vector<16x16xf32>
    %c0_15 = arith.constant 0 : index
    %c0_16 = arith.constant 0 : index
    %29 = vector.load %arg6[%c0_15, %c0_16] : memref<1x16xf32, #tpu.memory_space<vmem>>, vector<1x16xf32>
    %30 = vector.broadcast %29 : vector<1x16xf32> to vector<16x16xf32>
    %31 = arith.addf %28, %30 : vector<16x16xf32>
    %cst_17 = arith.constant dense<0.000000e+00> : vector<16xf32>
    %32 = vector.multi_reduction <add>, %31, %cst_17 [1] : vector<16x16xf32> to vector<16xf32>
    %33 = vector.shape_cast %32 : vector<16xf32> to vector<16x1xf32>
    %cst_18 = arith.constant 1.600000e+01 : f32
    %34 = vector.broadcast %cst_18 : f32 to vector<16x1xf32>
    %35 = arith.divf %33, %34 : vector<16x1xf32>
    %36 = arith.mulf %31, %31 : vector<16x16xf32>
    %cst_19 = arith.constant dense<0.000000e+00> : vector<16xf32>
    %37 = vector.multi_reduction <add>, %36, %cst_19 [1] : vector<16x16xf32> to vector<16xf32>
    %38 = vector.shape_cast %37 : vector<16xf32> to vector<16x1xf32>
    %cst_20 = arith.constant 1.600000e+01 : f32
    %39 = vector.broadcast %cst_20 : f32 to vector<16x1xf32>
    %40 = arith.divf %38, %39 : vector<16x1xf32>
    %41 = arith.mulf %35, %35 : vector<16x1xf32>
    %42 = arith.subf %40, %41 : vector<16x1xf32>
    %cst_21 = arith.constant 9.99999974E-6 : f32
    %43 = vector.broadcast %cst_21 : f32 to vector<16x1xf32>
    %44 = arith.addf %42, %43 : vector<16x1xf32>
    %45 = math.rsqrt %44 : vector<16x1xf32>
    %c0_22 = arith.constant 0 : index
    %c0_23 = arith.constant 0 : index
    %46 = vector.load %arg4[%c0_22, %c0_23] : memref<16x4xf32, #tpu.memory_space<vmem>>, vector<16x4xf32>
    %cst_24 = arith.constant dense<0.000000e+00> : vector<16x4xf32>
    %47 = tpu.matmul %31, %46, %cst_24 {dimension_numbers = #tpu.dot_dimension_numbers<[1], [0], [0], [1], [0, 0, 1, 1], [], []>} : vector<16x16xf32>, vector<16x4xf32>, vector<16x4xf32> -> vector<16x4xf32>
    %c0_25 = arith.constant 0 : index
    %c0_26 = arith.constant 0 : index
    %48 = vector.load %arg9[%c0_25, %c0_26] : memref<1x4xf32, #tpu.memory_space<vmem>>, vector<1x4xf32>
    %49 = vector.broadcast %35 : vector<16x1xf32> to vector<16x4xf32>
    %50 = vector.broadcast %48 : vector<1x4xf32> to vector<16x4xf32>
    %51 = arith.mulf %49, %50 : vector<16x4xf32>
    %52 = arith.subf %47, %51 : vector<16x4xf32>
    %53 = vector.broadcast %45 : vector<16x1xf32> to vector<16x4xf32>
    %54 = arith.mulf %53, %52 : vector<16x4xf32>
    %c0_27 = arith.constant 0 : index
    %c0_28 = arith.constant 0 : index
    %55 = vector.load %arg7[%c0_27, %c0_28] : memref<1x4xf32, #tpu.memory_space<vmem>>, vector<1x4xf32>
    %56 = vector.broadcast %55 : vector<1x4xf32> to vector<16x4xf32>
    %57 = arith.addf %54, %56 : vector<16x4xf32>
    %58 = tpu.transpose %57, [1, 0] : vector<16x4xf32> -> vector<4x16xf32>
    %c0_29 = arith.constant 0 : index
    %c0_30 = arith.constant 0 : index
    %59 = vector.load %arg10[%c0_29, %c0_30] : memref<4x16xf32, #tpu.memory_space<vmem>>, vector<4x16xf32>
    tpu.vector_store %arg10[%c0_29, %c0_30], %58 {strides = array<i32>} : memref<4x16xf32, #tpu.memory_space<vmem>>, vector<4x16xf32>,
    return
  }
  func.func @transform_0(%arg0: i32) -> (i32, i32) {
    %c0_i32 = arith.constant 0 : i32
    %c0_i32_0 = arith.constant 0 : i32
    return %arg0, %c0_i32 : i32, i32
  }
  func.func @transform_1(%arg0: i32) -> (i32, i32) {
    %c0_i32 = arith.constant 0 : i32
    %c0_i32_0 = arith.constant 0 : i32
    %c0_i32_1 = arith.constant 0 : i32
    return %c0_i32, %c0_i32_0 : i32, i32
  }
  func.func @transform_2(%arg0: i32) -> (i32, i32) {
    %c0_i32 = arith.constant 0 : i32
    %c0_i32_0 = arith.constant 0 : i32
    %c0_i32_1 = arith.constant 0 : i32
    return %c0_i32, %c0_i32_0 : i32, i32
  }
  func.func @transform_3(%arg0: i32) -> (i32, i32) {
    %c0_i32 = arith.constant 0 : i32
    %c0_i32_0 = arith.constant 0 : i32
    %c0_i32_1 = arith.constant 0 : i32
    return %c0_i32, %c0_i32_0 : i32, i32
  }
  func.func @transform_4(%arg0: i32) -> (i32, i32) {
    %c0_i32 = arith.constant 0 : i32
    %c0_i32_0 = arith.constant 0 : i32
    %c0_i32_1 = arith.constant 0 : i32
    return %c0_i32, %c0_i32_0 : i32, i32
  }
  func.func @transform_5(%arg0: i32) -> (i32, i32) {
    %c0_i32 = arith.constant 0 : i32
    %c0_i32_0 = arith.constant 0 : i32
    %c0_i32_1 = arith.constant 0 : i32
    return %c0_i32, %c0_i32_0 : i32, i32
  }
  func.func @transform_6(%arg0: i32) -> (i32, i32) {
    %c0_i32 = arith.constant 0 : i32
    %c0_i32_0 = arith.constant 0 : i32
    %c0_i32_1 = arith.constant 0 : i32
    return %c0_i32, %c0_i32_0 : i32, i32
  }
  func.func @transform_7(%arg0: i32) -> (i32, i32) {
    %c0_i32 = arith.constant 0 : i32
    %c0_i32_0 = arith.constant 0 : i32
    %c0_i32_1 = arith.constant 0 : i32
    return %c0_i32, %c0_i32_0 : i32, i32
  }
  func.func @transform_8(%arg0: i32) -> (i32, i32) {
    %c0_i32 = arith.constant 0 : i32
    %c0_i32_0 = arith.constant 0 : i32
    %c0_i32_1 = arith.constant 0 : i32
    return %c0_i32, %c0_i32_0 : i32, i32
  }
  func.func @transform_9(%arg0: i32) -> (i32, i32) {
    %c0_i32 = arith.constant 0 : i32
    %c0_i32_0 = arith.constant 0 : i32
    return %c0_i32, %arg0 : i32, i32
  }
}

</mosaic_0001>

<bundles_post_ra>
// kernel: outputlayer_forward.1
= control target key start
LH: loop header
LB: loop body
LE: loop exit
PB: predicated region body
PF: predicated region fallthrough
CT: control target
= control target key end

     0   :  { %s1155_s0 = inlined_call_operand.vmem [shape: f32[16,512], index: 0, kind: input, shape index: {}]   ;;  %s1156_s1 = inlined_call_operand.vmem [shape: f32[512,64], index: 1, kind: input, shape index: {}]   ;;  %s1157_s2 = inlined_call_operand.vmem [shape: f32[64,16], index: 2, kind: input, shape index: {}]   ;;  %s1158_s3 = inlined_call_operand.vmem [shape: f32[16,4], index: 3, kind: input, shape index: {}]   ;;  %s1159_s4 = inlined_call_operand.vmem [shape: f32[1,64], index: 4, kind: input, shape index: {}]   ;;  %s1160_s5 = inlined_call_operand.vmem [shape: f32[1,16], index: 5, kind: input, shape index: {}]   ;;  %s1161_s6 = inlined_call_operand.vmem [shape: f32[1,4], index: 6, kind: input, shape index: {}]   ;;  %s1162_s7 = inlined_call_operand.vmem [shape: f32[1,16], index: 7, kind: input, shape index: {}]   ;;  %s1163_s8 = inlined_call_operand.vmem [shape: f32[1,4], index: 8, kind: input, shape index: {}]   ;;  %s1164_s9 = inlined_call_operand.hbm [shape: f32[4,16], index: 9, kind: output, shape index: {}]  }
   0x1   :  { %v57_v0 = vld [vmem:[%s1156_s1 + $0x80] sm:$0xff]  ;;  %v58_v1 = vld [vmem:[%s1156_s1 + $0x88] sm:$0xff]  ;;  %v59_v11 = vld [vmem:[%s1156_s1 + $0x90] sm:$0xff] }
   0x2   :  { %v41_v2 = vld [vmem:[%s1156_s1] sm:$0xff]  ;;  %v707_v3 = vpack.c.bf16 %v58_v1, %v57_v0  ;;  %v42_v4 = vld [vmem:[%s1156_s1 + $0x8] sm:$0xff]  ;;  %v60_v13 = vld [vmem:[%s1156_s1 + $0x98] sm:$0xff] }
   0x3   :  { %v89_v5 = vld [vmem:[%s1156_s1 + $0x180] sm:$0xff]  ;;  %v90_v6 = vld [vmem:[%s1156_s1 + $0x188] sm:$0xff]  ;;  %v709_v7 = vpack.c.bf16 %v42_v4, %v41_v2  ;;  %v43_v14 = vld [vmem:[%s1156_s1 + $0x10] sm:$0xff]  ;;  %v711_v16 = vpack.c.bf16 %v60_v13, %v59_v11 }
   0x4   :  { %v739_v8 = vpack.c.bf16 %v90_v6, %v89_v5  ;;  %v73_v9 = vld [vmem:[%s1156_s1 + $0x100] sm:$0xff]  ;;  %v74_v10 = vld [vmem:[%s1156_s1 + $0x108] sm:$0xff]  ;;  %708 = vmatprep.subr.bf16.mxu0 %v707_v3  ;;  %v44_v15 = vld [vmem:[%s1156_s1 + $0x18] sm:$0xff] }
   0x5   :  { %v741_v12 = vpack.c.bf16 %v74_v10, %v73_v9  ;;  %710 = vmatpush3.bf16.msra.mxu0 %v709_v7  ;;  %v713_v17 = vpack.c.bf16 %v44_v15, %v43_v14  ;;  %v91_v18 = vld [vmem:[%s1156_s1 + $0x190] sm:$0xff]  ;;  %v92_v19 = vld [vmem:[%s1156_s1 + $0x198] sm:$0xff]  ;;  %v61_v23 = vld [vmem:[%s1156_s1 + $0xa0] sm:$0xff] }
   0x6   :  { %740 = vmatprep.subr.bf16.mxu1 %v739_v8  ;;  %v75_v20 = vld [vmem:[%s1156_s1 + $0x110] sm:$0xff]  ;;  %v743_v21 = vpack.c.bf16 %v92_v19, %v91_v18  ;;  %v76_v22 = vld [vmem:[%s1156_s1 + $0x118] sm:$0xff]  ;;  %v62_v24 = vld [vmem:[%s1156_s1 + $0xa8] sm:$0xff]  ;;  %712 = vmatprep.subr.bf16.mxu0 %v711_v16 }
   0x7   :  { %742 = vmatpush3.bf16.msra.mxu1 %v741_v12  ;;  %v745_v25 = vpack.c.bf16 %v76_v22, %v75_v20  ;;  %v715_v26 = vpack.c.bf16 %v62_v24, %v61_v23  ;;  %v45_v27 = vld [vmem:[%s1156_s1 + $0x20] sm:$0xff]  ;;  %v46_v28 = vld [vmem:[%s1156_s1 + $0x28] sm:$0xff]  ;;  %v63_v35 = vld [vmem:[%s1156_s1 + $0xb0] sm:$0xff] }
   0x8   :  { %v93_v29 = vld [vmem:[%s1156_s1 + $0x1a0] sm:$0xff]  ;;  %744 = vmatprep.subr.bf16.mxu1 %v743_v21  ;;  %v94_v30 = vld [vmem:[%s1156_s1 + $0x1a8] sm:$0xff]  ;;  %v717_v33 = vpack.c.bf16 %v46_v28, %v45_v27  ;;  %v64_v36 = vld [vmem:[%s1156_s1 + $0xb8] sm:$0xff] }
   0x9   :  { %v77_v31 = vld [vmem:[%s1156_s1 + $0x120] sm:$0xff]  ;;  %v78_v32 = vld [vmem:[%s1156_s1 + $0x128] sm:$0xff]  ;;  %714 = vmatpush3.bf16.msra.mxu0 %v713_v17  ;;  %v747_v34 = vpack.c.bf16 %v94_v30, %v93_v29  ;;  %v47_v37 = vld [vmem:[%s1156_s1 + $0x30] sm:$0xff]  ;;  %v719_v39 = vpack.c.bf16 %v64_v36, %v63_v35 }
   0xa   :  { %716 = vmatprep.subr.bf16.mxu0 %v715_v26  ;;  %v749_v38 = vpack.c.bf16 %v78_v32, %v77_v31  ;;  %v48_v40 = vld [vmem:[%s1156_s1 + $0x38] sm:$0xff]  ;;  %v95_v41 = vld [vmem:[%s1156_s1 + $0x1b0] sm:$0xff]  ;;  %v65_v46 = vld [vmem:[%s1156_s1 + $0xc0] sm:$0xff] }
   0xb   :  { %746 = vmatpush3.bf16.msra.mxu1 %v745_v25  ;;  %v96_v42 = vld [vmem:[%s1156_s1 + $0x1b8] sm:$0xff]  ;;  %v79_v44 = vld [vmem:[%s1156_s1 + $0x130] sm:$0xff]  ;;  %v66_v47 = vld [vmem:[%s1156_s1 + $0xc8] sm:$0xff]  ;;  %v721_v48 = vpack.c.bf16 %v48_v40, %v47_v37 }
   0xc   :  { %748 = vmatprep.subr.bf16.mxu1 %v747_v34  ;;  %v751_v43 = vpack.c.bf16 %v96_v42, %v95_v41  ;;  %v80_v45 = vld [vmem:[%s1156_s1 + $0x138] sm:$0xff]  ;;  %v97_v49 = vld [vmem:[%s1156_s1 + $0x1c0] sm:$0xff]  ;;  %v98_v50 = vld [vmem:[%s1156_s1 + $0x1c8] sm:$0xff]  ;;  %v723_v52 = vpack.c.bf16 %v66_v47, %v65_v46 }
   0xd   :  { %718 = vmatpush3.bf16.msra.mxu0 %v717_v33  ;;  %v753_v51 = vpack.c.bf16 %v80_v45, %v79_v44  ;;  %v49_v53 = vld [vmem:[%s1156_s1 + $0x40] sm:$0xff]  ;;  %v50_v54 = vld [vmem:[%s1156_s1 + $0x48] sm:$0xff]  ;;  %v755_v56 = vpack.c.bf16 %v98_v50, %v97_v49  ;;  %v67_v58 = vld [vmem:[%s1156_s1 + $0xd0] sm:$0xff] }
   0xe   :  { %720 = vmatprep.subr.bf16.mxu0 %v719_v39  ;;  %v81_v55 = vld [vmem:[%s1156_s1 + $0x140] sm:$0xff]  ;;  %v82_v57 = vld [vmem:[%s1156_s1 + $0x148] sm:$0xff]  ;;  %v68_v59 = vld [vmem:[%s1156_s1 + $0xd8] sm:$0xff]  ;;  %v725_v62 = vpack.c.bf16 %v50_v54, %v49_v53 }
   0xf   :  { %750 = vmatpush3.bf16.msra.mxu1 %v749_v38  ;;  %v99_v60 = vld [vmem:[%s1156_s1 + $0x1d0] sm:$0xff]  ;;  %v100_v61 = vld [vmem:[%s1156_s1 + $0x1d8] sm:$0xff]  ;;  %v757_v63 = vpack.c.bf16 %v82_v57, %v81_v55  ;;  %v727_v0 = vpack.c.bf16 %v68_v59, %v67_v58  ;;  %v69_v6 = vld [vmem:[%s1156_s1 + $0xe0] sm:$0xff] }
  0x10   :  { %752 = vmatprep.subr.bf16.mxu1 %v751_v43  ;;  %v51_v1 = vld [vmem:[%s1156_s1 + $0x50] sm:$0xff]  ;;  %v52_v2 = vld [vmem:[%s1156_s1 + $0x58] sm:$0xff]  ;;  %v759_v4 = vpack.c.bf16 %v100_v61, %v99_v60  ;;  %v70_v7 = vld [vmem:[%s1156_s1 + $0xe8] sm:$0xff] }
  0x11   :  { %722 = vmatpush3.bf16.msra.mxu0 %v721_v48  ;;  %v83_v3 = vld [vmem:[%s1156_s1 + $0x150] sm:$0xff]  ;;  %v84_v5 = vld [vmem:[%s1156_s1 + $0x158] sm:$0xff]  ;;  %v101_v8 = vld [vmem:[%s1156_s1 + $0x1e0] sm:$0xff]  ;;  %v729_v10 = vpack.c.bf16 %v52_v2, %v51_v1  ;;  %v731_v14 = vpack.c.bf16 %v70_v7, %v69_v6 }
  0x12   :  { %724 = vmatprep.subr.bf16.mxu0 %v723_v52  ;;  %v102_v9 = vld [vmem:[%s1156_s1 + $0x1e8] sm:$0xff]  ;;  %v53_v11 = vld [vmem:[%s1156_s1 + $0x60] sm:$0xff]  ;;  %v761_v13 = vpack.c.bf16 %v84_v5, %v83_v3  ;;  %v71_v19 = vld [vmem:[%s1156_s1 + $0xf0] sm:$0xff] }
  0x13   :  { %754 = vmatpush3.bf16.msra.mxu1 %v753_v51  ;;  %v54_v12 = vld [vmem:[%s1156_s1 + $0x68] sm:$0xff]  ;;  %v85_v15 = vld [vmem:[%s1156_s1 + $0x160] sm:$0xff]  ;;  %v763_v18 = vpack.c.bf16 %v102_v9, %v101_v8  ;;  %v72_v20 = vld [vmem:[%s1156_s1 + $0xf8] sm:$0xff] }
  0x14   :  { %756 = vmatprep.subr.bf16.mxu1 %v755_v56  ;;  %v86_v16 = vld [vmem:[%s1156_s1 + $0x168] sm:$0xff]  ;;  %v36_v21 = vld [vmem:[%s1155_s0 + $0x18] sm:$0xff]  ;;  %v103_v22 = vld [vmem:[%s1156_s1 + $0x1f0] sm:$0xff]  ;;  %v733_v24 = vpack.c.bf16 %v54_v12, %v53_v11 }
  0x15   :  { %726 = vmatpush3.bf16.msra.mxu0 %v725_v62  ;;  %v34_v17 = vld [vmem:[%s1155_s0 + $0x8] sm:$0xff]  ;;  %v104_v23 = vld [vmem:[%s1156_s1 + $0x1f8] sm:$0xff]  ;;  %251 = vmatprep.mubr.f32.mxu1 %v36_v21 }
  0x16   :  { %728 = vmatprep.subr.bf16.mxu0 %v727_v0  ;;  %176 = vmatprep.mubr.f32.mxu0 %v34_v17 }
  0x17   :  { %758 = vmatpush3.bf16.msra.mxu1 %v757_v63 }
  0x18   :  { %760 = vmatprep.subr.bf16.mxu1 %v759_v4 }
  0x19   :  { %730 = vmatpush3.bf16.msra.mxu0 %v729_v10 }
  0x1a   :  { %14 = vsyncpa [#allocation3], 0  ;;  %732 = vmatprep.subr.bf16.mxu0 %v731_v14  ;;  %v765_v25 = vpack.c.bf16 %v86_v16, %v85_v15  ;;  %v735_v26 = vpack.c.bf16 %v72_v20, %v71_v19  ;;  %v55_v27 = vld [vmem:[%s1156_s1 + $0x70] sm:$0xff]  ;;  %v56_v28 = vld [vmem:[%s1156_s1 + $0x78] sm:$0xff]  ;;  %v767_v30 = vpack.c.bf16 %v104_v23, %v103_v22  ;;  %vm262_vm0 = vcmask 523264   ;;  %s825_s28 = smov [#allocation2]  }
  0x1b   :  { %762 = vmatpush3.bf16.msra.mxu1 %v761_v13  ;;  %v87_v29 = vld [vmem:[%s1156_s1 + $0x170] sm:$0xff]  ;;  %v88_v31 = vld [vmem:[%s1156_s1 + $0x178] sm:$0xff]  ;;  %v290_v32 = vld [vmem:[%s1157_s2] sm:$0xff]  ;;  %v737_v34 = vpack.c.bf16 %v56_v28, %v55_v27  ;;  %vm401_vm1 = vcmask 130048   ;;  %vm566_vm2 = vcmask 125952  }
  0x1c   :  { %764 = vmatprep.subr.bf16.mxu1 %v763_v18  ;;  %v291_v33 = vld [vmem:[%s1157_s2 + $0x8] sm:$0xff]  ;;  %v769_v35 = vpack.c.bf16 %v88_v31, %v87_v29  ;;  %v33_v37 = vld [vmem:[%s1155_s0] sm:$0xff]  ;;  %v35_v38 = vld [vmem:[%s1155_s0 + $0x10] sm:$0xff] }
  0x1d   :  { %734 = vmatpush3.bf16.msra.mxu0 %v733_v24  ;;  %v771_v36 = vpack.c.bf16 %v291_v33, %v290_v32  ;;  %v38_v39 = vld [vmem:[%s1155_s0 + $0x28] sm:$0xff]  ;;  %v40_v40 = vld [vmem:[%s1155_s0 + $0x38] sm:$0xff]  ;;  %v37_v41 = vld [vmem:[%s1155_s0 + $0x20] sm:$0xff] }
  0x1e   :  { %736 = vmatprep.subr.bf16.mxu0 %v735_v26  ;;  %v39_v42 = vld [vmem:[%s1155_s0 + $0x30] sm:$0xff]  ;;  %v293_v44 = vld [vmem:[%s1157_s2 + $0x18] sm:$0xff]  ;;  %v294_v46 = vld [vmem:[%s1157_s2 + $0x20] sm:$0xff] }
  0x1f   :  { %766 = vmatpush3.bf16.msra.mxu1 %v765_v25  ;;  %v292_v43 = vld [vmem:[%s1157_s2 + $0x10] sm:$0xff]  ;;  %v295_v47 = vld [vmem:[%s1157_s2 + $0x28] sm:$0xff]  ;;  %v297_v50 = vld [vmem:[%s1157_s2 + $0x38] sm:$0xff] }
  0x20   :  { %768 = vmatprep.subr.bf16.mxu1 %v767_v30  ;;  %v775_v45 = vpack.c.bf16 %v293_v44, %v292_v43  ;;  %v779_v48 = vpack.c.bf16 %v295_v47, %v294_v46  ;;  %v296_v49 = vld [vmem:[%s1157_s2 + $0x30] sm:$0xff]  ;;  %v582_v53 = vld [vmem:[%s1159_s4] ss:$0 sm:$0xff]  ;;  %v430_v12 = vld [vmem:[%s1158_s3 + $0x8] sm:$0xff] }
  0x21   :  { %738 = vmatpush3.bf16.msra.mxu0 %v737_v34  ;;  %v783_v51 = vpack.c.bf16 %v297_v50, %v296_v49  ;;  %v429_v11 = vld [vmem:[%s1158_s3] sm:$0xff] }
  0x22   :  { %772 = vmatprep.subr.bf16.mxu0 %v771_v36  ;;  %v787_v13 = vpack.c.bf16 %v430_v12, %v429_v11  ;;  %v585_v28 = vld [vmem:[%s1162_s7] ss:$0 sm:$0xff] }
  0x23   :  { %770 = vmatpush3.bf16.msra.mxu1 %v769_v35  ;;  %v586_v35 = vld [vmem:[%s1160_s5] ss:$0 sm:$0xff] }
  0x24   :  { %177 = vmatmul.mubr.f32.vlgmr.msra.gmra.mrb[0].mxu0 %v33_v37  ;;  %788 = vmatprep.subr.bf16.mxu1 %v787_v13 }
  0x25   :  { %181 = vmatprep.mubr.f32.mxu0 %v38_v39  ;;  %774 = vmatpush3.bf16.msra.mxu0 %v771_v36 }
  0x26   :  { %252 = vmatmul.mubr.f32.vlgmr.msra.gmra.mrb[0].mxu1 %v35_v38  ;;  %776 = vmatprep.subr.bf16.mxu0 %v775_v45 }
  0x27   :  { %256 = vmatprep.mubr.f32.mxu1 %v40_v40  ;;  %790 = vmatpush3.bf16.msra.mxu1 %v787_v13 }
  0x28   :  { %182 = vmatmul.mubr.f32.gmra.mrb[2].mxu0 %v37_v41 }
  0x29   :  { %778 = vmatpush3.bf16.msra.mxu0 %v775_v45 }
  0x2a   :  { %257 = vmatmul.mubr.f32.gmra.mrb[2].mxu1 %v39_v42  ;;  %780 = vmatprep.subr.bf16.mxu0 %v779_v48 }
  0x2d   :  { %782 = vmatpush3.bf16.msra.mxu0 %v779_v48 }
  0x2e   :  { %784 = vmatprep.subr.bf16.mxu0 %v783_v51 }
  0x31   :  { %786 = vmatpush3.bf16.msra.mxu0 %v783_v51 }
  0xf7   :  { %v623_v52 = vpop.f32.mrb[0].mxu0 }
  0xf8   :  { %v624_v54 = vpop.f32.mrb[1].mxu0 }
  0xf9   :  { %v661_v55 = vpop.f32.mrb[0].mxu1  ;;  %v625_v56 = vadd.f32 %v624_v54, %v623_v52 }
  0xfa   :  { %v662_v57 = vpop.f32.mrb[1].mxu1 }
  0xfb   :  { %v663_v58 = vadd.f32 %v662_v57, %v661_v55  ;;  %v179_v59 = vadd.f32 %v625_v56, %v582_v53  ;;  %v626_v60 = vpop.f32.mrb[2].mxu0 }
  0xfc   :  { %v627_v61 = vpop.f32.mrb[3].mxu0 }
  0xfd   :  { %v664_v62 = vpop.f32.mrb[2].mxu1  ;;  %v254_v63 = vadd.f32 %v663_v58, %v179_v59  ;;  %v628_v0 = vadd.f32 %v627_v61, %v626_v60 }
  0xfe   :  { %v665_v1 = vpop.f32.mrb[3].mxu1 }
  0xff   :  { %v666_v2 = vadd.f32 %v665_v1, %v664_v62  ;;  %v184_v3 = vadd.f32 %v628_v0, %v582_v53  ;;  %697 = vmatprep.mubr.msk.f32.mxu0 %vm262_vm0, %v254_v63  ;;  %v263_v4 = vsel %vm262_vm0, %v254_v63, 0.0  ;;  %v272_v5 = vmul.f32 %v254_v63, %v254_v63  ;;  %v589_v62 = vld [vmem:[%s1163_s8] ss:$0 sm:$0xff]  ;;  %s574_s8 = sshll.u32 %s825_s28, 4  ;;  %s575_s8 = int_to_ptr.vmem [resolvable:$true] %s574_s8 }
 0x100   :  { %264 = vadd.xlane.f32.xlu0 %v263_v4  ;;  %s801_s29 = scalar_lea.vmem %s575_s8, 64  ;;  %p806_p1 = scmp.lt.s32.totalorder %s575_s8, %s575_s8 }
 0x101   :  { %v259_v6 = vadd.f32 %v666_v2, %v184_v3  ;;  %v274_v7 = vsel %vm262_vm0, %v272_v5, 0.0  ;;  %p802_p0 = scmp.ne.s32.totalorder %s575_s8, %s801_s29  ;;  %p807_p2 = scmp.lt.s32.totalorder %s801_s29, %s801_s29 }
 0x102   :  { %275 = vadd.xlane.f32.xlu1 %v274_v7 }
 0x103   :  { %698 = vmatmul.mubr.msk.f32.vlgmr.msra.gmra.mrb[4].mxu0 %vm262_vm0, %v259_v6  ;;  %v266_v8 = vsel %vm262_vm0, %v259_v6, 0.0  ;;  %v273_v9 = vmul.f32 %v259_v6, %v259_v6  ;;  %v590_v6 = vld [vmem:[%s1161_s6] ss:$0 sm:$0xff]  ;;  %p808_p3 = por %p807_p2, %p806_p1 }
 0x104   :  { %267 = vadd.xlane.f32.xlu0 %v266_v8 }
 0x105   :  { %v277_v10 = vsel %vm262_vm0, %v273_v9, 0.0  ;;  %p809_p4 = pnand %p808_p3, %p802_p0 }
 0x106   :  { %278 = vadd.xlane.f32.xlu1 %v277_v10 }
 0x18d   :  { %v265_v14 = vpop.xlane.xlu0 %264 }
 0x18e   :  { %v270_v18 = vmul.f32 0.015625, %v265_v14 }
 0x18f   :  { %v276_v15 = vpop.xlane.xlu1 %275 }
 0x190   :  { %v282_v22 = vmul.f32 %v270_v18, %v270_v18  ;;  %v280_v23 = vmul.f32 0.015625, %v276_v15  ;;  %v386_v31 = vmul.f32 %v585_v28, %v270_v18 }
 0x191   :  { %v268_v16 = vpop.xlane.xlu0 %267 }
 0x192   :  { %v271_v17 = vmul.f32 0.015625, %v268_v16  ;;  %v284_v25 = vsub.f32 %v280_v23, %v282_v22 }
 0x193   :  { %v279_v19 = vpop.xlane.xlu1 %278 }
 0x194   :  { %v283_v20 = vmul.f32 %v271_v17, %v271_v17  ;;  %v281_v21 = vmul.f32 0.015625, %v279_v19  ;;  %v286_v27 = vadd.f32 1e-05, %v284_v25  ;;  %v387_v29 = vmul.f32 %v585_v28, %v271_v17 }
 0x196   :  { %v285_v24 = vsub.f32 %v281_v21, %v283_v20 }
 0x198   :  { %v287_v26 = vadd.f32 1e-05, %v285_v24 }
 0x19a   :  { %793 = vrsqrt.f32 %v287_v26 }
 0x19b   :  { %795 = vrsqrt.f32 %v286_v27 }
 0x1a4   :  { %v794_v34 = vpop.eup %793 }
 0x1a5   :  { %v796_v37 = vpop.eup %795 }
 0x1d6   :  { %v699_v30 = vpop.f32.mrb[4].mxu0 }
 0x1d7   :  { %v389_v32 = vsub.f32 %v699_v30, %v387_v29  ;;  %v370_v33 = vpop.f32.mrb[5].mxu0 }
 0x1d8   :  { %v388_v36 = vsub.f32 %v370_v33, %v386_v31 }
 0x1d9   :  { %v391_v38 = vmul.f32 %v794_v34, %v389_v32 }
 0x1da   :  { %v390_v39 = vmul.f32 %v796_v37, %v388_v36 }
 0x1db   :  { %v400_v40 = vadd.f32 %v586_v35, %v391_v38 }
 0x1dc   :  { %v399_v41 = vadd.f32 %v586_v35, %v390_v39 }
 0x1dd   :  { %v405_v42 = vsel %vm401_vm1, %v400_v40, 0.0  ;;  %v412_v43 = vmul.f32 %v400_v40, %v400_v40 }
 0x1de   :  { %704 = vmatprep.mubr.msk.f32.mxu1 %vm401_vm1, %v399_v41  ;;  %406 = vadd.xlane.f32.xlu1 %v405_v42  ;;  %v402_v44 = vsel %vm401_vm1, %v399_v41, 0.0  ;;  %v411_v45 = vmul.f32 %v399_v41, %v399_v41 }
 0x1df   :  { %403 = vadd.xlane.f32.xlu0 %v402_v44  ;;  %705 = vmatmul.mubr.msk.f32.vlgmr.msra.gmra.mrb[4].mxu1 %vm401_vm1, %v400_v40  ;;  %v416_v46 = vsel %vm401_vm1, %v412_v43, 0.0 }
 0x1e0   :  { %v413_v47 = vsel %vm401_vm1, %v411_v45, 0.0 }
 0x1e2   :  { %417 = vadd.xlane.f32.xlu1 %v416_v46 }
 0x1e3   :  { %414 = vadd.xlane.f32.xlu0 %v413_v47 }
 0x26b   :  { %v407_v49 = vpop.xlane.xlu1 %406 }
 0x26c   :  { %v404_v48 = vpop.xlane.xlu0 %403  ;;  %v410_v53 = vmul.f32 0.0625, %v407_v49 }
 0x26d   :  { %v409_v51 = vmul.f32 0.0625, %v404_v48 }
 0x26e   :  { %v422_v57 = vmul.f32 %v410_v53, %v410_v53  ;;  %v520_v0 = vmul.f32 %v589_v62, %v410_v53 }
 0x26f   :  { %v418_v52 = vpop.xlane.xlu1 %417  ;;  %v421_v55 = vmul.f32 %v409_v51, %v409_v51  ;;  %v519_v1 = vmul.f32 %v589_v62, %v409_v51 }
 0x270   :  { %v415_v50 = vpop.xlane.xlu0 %414  ;;  %v420_v56 = vmul.f32 0.0625, %v418_v52 }
 0x271   :  { %v419_v54 = vmul.f32 0.0625, %v415_v50 }
 0x272   :  { %v424_v59 = vsub.f32 %v420_v56, %v422_v57 }
 0x273   :  { %v423_v58 = vsub.f32 %v419_v54, %v421_v55 }
 0x274   :  { %v426_v61 = vadd.f32 1e-05, %v424_v59 }
 0x275   :  { %v425_v60 = vadd.f32 1e-05, %v423_v58 }
 0x277   :  { %797 = vrsqrt.f32 %v425_v60 }
 0x278   :  { %799 = vrsqrt.f32 %v426_v61 }
 0x281   :  { %v798_v5 = vpop.eup %797 }
 0x282   :  { %v800_v8 = vpop.eup %799 }
 0x2b2   :  { %v706_v63 = vpop.f32.mrb[4].mxu1 }
 0x2b3   :  { %v503_v2 = vpop.f32.mrb[5].mxu1  ;;  %v522_v3 = vsub.f32 %v706_v63, %v520_v0 }
 0x2b4   :  { %v521_v4 = vsub.f32 %v503_v2, %v519_v1 }
 0x2b5   :  { %v524_v9 = vmul.f32 %v800_v8, %v522_v3 }
 0x2b6   :  { %v523_v7 = vmul.f32 %v798_v5, %v521_v4 }
 0x2b7   :  { %v533_v11 = vadd.f32 %v590_v6, %v524_v9 }
 0x2b8   :  { %v532_v10 = vadd.f32 %v590_v6, %v523_v7 }
 0x2ba   :  { %534 = vxpose.xlu0.b32.start [1/2] (short) (narrow) %v532_v10, 8 }
 0x2be   :  { %535 = vxpose.xlu0.b32.end [2/2] (short) (narrow) %v533_v11, 8 }
 0x33a   :  { %v550_v12 = vpop.trf.xlu0 }
 0x33b   :  { %567 = vst.msk [vmem:[#allocation2] sm:$0xf] %vm566_vm2, %v550_v12 }
 0x33c   :  { %812 = shalt.err (!%p809_p4)
}
 0x33d   :  { %s813_s10 = scalar_lea.hbm %s1164_s9, 64 }
 0x33e   :  { %p814_p5 = scmp.ne.s32.totalorder %s1164_s9, %s813_s10  ;;  %p817_p6 = scmp.lt.u32.totalorder %s813_s10, %s1164_s9 }
 0x340   :  { %p819_p7 = pnand %p817_p6, %p814_p5 }
 0x342   :  { %822 = shalt.err (!%p819_p7)
}
 0x343   :  { %577 = dma.vmem_to_hbm [thread:$0]  %s575_s8, 64, %s1164_s9, [#allocation3]  }
 0x344   :  { %823 = dma.done.wait [#allocation3], 64  }
 0x345   :  { %824 = vsyncadd [#allocation3], 4294967232 }
 0x346   :  { %581 = vsyncpa [#allocation3], 1 }

</bundles_post_ra>
